<compile_context>
chip_gen: v5e
topology: v5e:2x2
jax: 0.10.0
libtpu: 0.0.40
codegen_flags: <defaults>
</compile_context>

<pallas_src>
import jax
import jax.numpy as jnp
import numpy as np
from jax.experimental import pallas as pl
from jax.experimental.pallas import tpu as pltpu

SELU_ALPHA = 1.6732632423543772
SELU_SCALE = 1.0507009873554805

CONV1_CH = 128   # conv1 output channels (fixed by the module)
N_POS = 9        # 3x3 output positions of conv1 (spatial input must be 3x3)


def _selu(x):
    return SELU_SCALE * jnp.where(x > 0, x, SELU_ALPHA * (jnp.exp(x) - 1.0))


# ---------------------------------------------------------------------------
# Single fused kernel: conv1(+SELU) -> conv2(+SELU) -> fused heads ->
# clamp/exp -> reparameterized sample -> single lane-padded store.
# ---------------------------------------------------------------------------
def encoder_kernel(x_ref, w1_ref, b1_ref, w2_ref, b2_ref, wh_ref, bh_ref,
                   eps_ref, out_ref):
    O = eps_ref.shape[-1]

    # conv1 (im2col folded into w1_ref) + SELU.  Result == q_in (B, 9*128).
    h = _selu(jnp.dot(x_ref[...], w1_ref[...],
                      preferred_element_type=jnp.float32) + b1_ref[...])
    # conv2 (3x3 valid conv on a 3x3 map == one dot over (position, channel)).
    # TODO(synk): nn.Dropout layers are inference-mode identity here.
    q = _selu(jnp.dot(h, w2_ref[...],
                      preferred_element_type=jnp.float32) + b2_ref[...])
    # mean & var heads fused into a single (H, 2*O) matmul.
    head = jnp.dot(q, wh_ref[...],
                   preferred_element_type=jnp.float32) + bh_ref[...]
    q_m = head[:, :O]
    log_var = jnp.clip(head[:, O:2 * O], -17.0, 10.0)
    scale = jnp.exp(0.5 * log_var)          # sqrt(exp(x)) == exp(x/2)
    q_v = scale * scale
    latent = q_m + scale * eps_ref[...]     # reparameterized sample

    # Single lane-padded output buffer: [q_m | q_v | latent | zero pad].
    out_ref[...] = jnp.zeros_like(out_ref)
    out_ref[:, 0:O] = q_m
    out_ref[:, O:2 * O] = q_v
    out_ref[:, 2 * O:3 * O] = latent


@jax.jit
def encoder_b8_forward(x, w1_big, b1_big, w2, b2, w_heads, b_heads, eps):
    """x: (B, Cin, 3, 3) NCHW (the conv stack requires 3x3 spatial input)."""
    B, Cin, Hs, Ws = x.shape
    assert Hs == 3 and Ws == 3
    O = eps.shape[-1]
    out_w = ((3 * O + 127) // 128) * 128           # lane-dense output width

    x_flat = x.reshape(B, Cin * 9)                 # (ci, y, x) flatten; free bitcast
    vmem = pl.BlockSpec(memory_space=pltpu.MemorySpace.VMEM)
    packed = pl.pallas_call(
        encoder_kernel,
        out_shape=jax.ShapeDtypeStruct((B, out_w), jnp.float32),
        in_specs=[vmem] * 8,
        out_specs=vmem,
    )(x_flat, w1_big, b1_big, w2, b2, w_heads, b_heads, eps)

    q_m = packed[:, 0:O]
    q_v = packed[:, O:2 * O]
    latent = packed[:, 2 * O:3 * O]
    # TODO(synk): torch.distributions.Normal ('dist') is not representable in a
    # kernel; its parameters (q_m, sqrt(q_v)) and the rsample are returned.
    return dict(q_m=q_m, q_v=q_v, latent=latent, sum_last=True)


# ---------------------------------------------------------------------------
# One-time setup: fold im2col (pad=1, 3x3 kernel, 3x3 map) into the conv1 weight.
# ---------------------------------------------------------------------------
def fold_im2col_into_w1(w1, cin):
    """w1: (cin*9, 128), rows in (ci, ky, kx) order (PyTorch conv-weight reshape).
    Returns W1_BIG: (cin*9, 9*128); column block p equals S_p @ w1."""
    w1 = np.asarray(w1, dtype=np.float32)
    w1_big = np.zeros((cin * 9, N_POS * CONV1_CH), dtype=np.float32)
    for oy in range(3):
        for ox in range(3):
            p = oy * 3 + ox
            for ky in range(3):
                for kx in range(3):
                    iy, ix = oy + ky - 1, ox + kx - 1
                    if 0 <= iy < 3 and 0 <= ix < 3:
                        for ci in range(cin):
                            m = ci * 9 + iy * 3 + ix      # input-pixel row
                            k = ci * 9 + ky * 3 + kx      # conv1-weight row
                            w1_big[m, p * CONV1_CH:(p + 1) * CONV1_CH] += w1[k]
    return jnp.asarray(w1_big)


def reference_forward(x, w1, b1, w2, b2, wm, bm, wv, bv, eps):
    """Pure-JAX reference implementing the original (unfolded) math."""
    B, Cin = x.shape[0], x.shape[1]
    x_pad = jnp.pad(x, ((0, 0), (0, 0), (1, 1), (1, 1)))
    cols = []
    for i in range(3):
        for j in range(3):
            cols.append(x_pad[:, :, i:i + 3, j:j + 3].reshape(B, Cin * 9))
    x_col = jnp.stack(cols, axis=1).reshape(B * 9, Cin * 9)
    h1 = _selu(x_col @ w1 + b1).reshape(B, N_POS * CONV1_CH)
    q = _selu(h1 @ w2 + b2)
    q_m = q @ wm + bm
    q_v = jnp.exp(jnp.clip(q @ wv + bv, -17.0, 10.0))
    latent = q_m + jnp.sqrt(q_v) * eps
    return q_m, q_v, latent


if __name__ == "__main__":
    # Small shapes consistent with the module: batch=2, n_input=4 channels,
    # spatial 3x3 (required by the conv stack), n_hidden=32, n_output=16.
    B, Cin, Hdim, Odim = 2, 4, 32, 16

    key = jax.random.PRNGKey(0)
    ks = jax.random.split(key, 10)
    x = jax.random.normal(ks[0], (B, Cin, 3, 3), jnp.float32)

    # conv1: 128 out channels, 3x3, padding=1 (rows in (ci, ky, kx) order)
    w1 = 0.1 * jax.random.normal(ks[1], (Cin * 9, CONV1_CH), jnp.float32)
    b1 = 0.01 * jax.random.normal(ks[2], (1, CONV1_CH), jnp.float32)
    # conv2: n_hidden out channels, 3x3 valid (rows in (position, channel)
    # order, matching the fused q_in layout == permuted PyTorch weight reshape)
    w2 = 0.05 * jax.random.normal(ks[3], (N_POS * CONV1_CH, Hdim), jnp.float32)
    b2 = 0.01 * jax.random.normal(ks[4], (1, Hdim), jnp.float32)
    # linear heads
    wm = 0.1 * jax.random.normal(ks[5], (Hdim, Odim), jnp.float32)
    bm = 0.01 * jax.random.normal(ks[6], (1, Odim), jnp.float32)
    wv = 0.1 * jax.random.normal(ks[7], (Hdim, Odim), jnp.float32)
    bv = 0.01 * jax.random.normal(ks[8], (1, Odim), jnp.float32)
    # standard-normal noise for the rsample (n_samples=1, squeeze=True, reparam)
    eps = jax.random.normal(ks[9], (B, Odim), jnp.float32)

    # One-time weight folding / fusion (setup, outside the forward pass).
    w1_big = fold_im2col_into_w1(w1, Cin)            # (Cin*9, 9*128)
    b1_big = jnp.tile(b1, (1, N_POS))                # (1, 9*128)
    w_heads = jnp.concatenate([wm, wv], axis=1)      # (Hdim, 2*Odim)
    b_heads = jnp.concatenate([bm, bv], axis=1)      # (1, 2*Odim)

    out = encoder_b8_forward(x, w1_big, b1_big, w2, b2, w_heads, b_heads, eps)
    jax.block_until_ready(out["latent"])

    assert out["q_m"].shape == (B, Odim)
    assert out["q_v"].shape == (B, Odim)
    assert out["latent"].shape == (B, Odim)
    assert bool(jnp.all(out["q_v"] > 0.0))

    # Cross-check the folded/fused kernel against the plain-JAX reference.
    rq_m, rq_v, rlat = reference_forward(x, w1, b1, w2, b2, wm, bm, wv, bv, eps)
    np.testing.assert_allclose(np.asarray(out["q_m"]), np.asarray(rq_m),
                               rtol=1e-4, atol=1e-5)
    np.testing.assert_allclose(np.asarray(out["q_v"]), np.asarray(rq_v),
                               rtol=1e-4, atol=1e-5)
    np.testing.assert_allclose(np.asarray(out["latent"]), np.asarray(rlat),
                               rtol=1e-4, atol=1e-5)

    print("KERNEL_OK")
</pallas_src>

<mosaic_0001>
module attributes {stable_mosaic.version = 11 : i64} {
  func.func @encoder_kernel(%arg0: memref<2x36xf32, #tpu.memory_space<vmem>>, %arg1: memref<36x1152xf32, #tpu.memory_space<vmem>>, %arg2: memref<1x1152xf32, #tpu.memory_space<vmem>>, %arg3: memref<1152x32xf32, #tpu.memory_space<vmem>>, %arg4: memref<1x32xf32, #tpu.memory_space<vmem>>, %arg5: memref<32x32xf32, #tpu.memory_space<vmem>>, %arg6: memref<1x32xf32, #tpu.memory_space<vmem>>, %arg7: memref<2x16xf32, #tpu.memory_space<vmem>>, %arg8: memref<2x128xf32, #tpu.memory_space<vmem>>) attributes {dimension_semantics = [], scalar_prefetch = 0 : i64, scratch_operands = 0 : i64, tpu.core_type = #tpu.core_type<tc>} {
    %c0 = arith.constant 0 : index
    %c0_0 = arith.constant 0 : index
    %0 = vector.load %arg0[%c0, %c0_0] : memref<2x36xf32, #tpu.memory_space<vmem>>, vector<2x36xf32>
    %c0_1 = arith.constant 0 : index
    %c0_2 = arith.constant 0 : index
    %1 = vector.load %arg1[%c0_1, %c0_2] : memref<36x1152xf32, #tpu.memory_space<vmem>>, vector<36x1152xf32>
    %cst = arith.constant dense<0.000000e+00> : vector<2x1152xf32>
    %2 = tpu.matmul %0, %1, %cst {dimension_numbers = #tpu.dot_dimension_numbers<[1], [0], [0], [1], [0, 0, 1, 1], [], []>} : vector<2x36xf32>, vector<36x1152xf32>, vector<2x1152xf32> -> vector<2x1152xf32>
    %c0_3 = arith.constant 0 : index
    %c0_4 = arith.constant 0 : index
    %3 = vector.load %arg2[%c0_3, %c0_4] : memref<1x1152xf32, #tpu.memory_space<vmem>>, vector<1x1152xf32>
    %4 = vector.broadcast %3 : vector<1x1152xf32> to vector<2x1152xf32>
    %5 = arith.addf %2, %4 : vector<2x1152xf32>
    %cst_5 = arith.constant 0.000000e+00 : f32
    %6 = vector.broadcast %cst_5 : f32 to vector<2x1152xf32>
    %7 = arith.cmpf ogt, %5, %6 : vector<2x1152xf32>
    %8 = math.exp %5 : vector<2x1152xf32>
    %cst_6 = arith.constant 1.000000e+00 : f32
    %9 = vector.broadcast %cst_6 : f32 to vector<2x1152xf32>
    %10 = arith.subf %8, %9 : vector<2x1152xf32>
    %cst_7 = arith.constant 1.67326319 : f32
    %11 = vector.broadcast %cst_7 : f32 to vector<2x1152xf32>
    %12 = arith.mulf %11, %10 : vector<2x1152xf32>
    %13 = arith.select %7, %5, %12 : vector<2x1152xi1>, vector<2x1152xf32>
    %cst_8 = arith.constant 1.05070102 : f32
    %14 = vector.broadcast %cst_8 : f32 to vector<2x1152xf32>
    %15 = arith.mulf %14, %13 : vector<2x1152xf32>
    %c0_9 = arith.constant 0 : index
    %c0_10 = arith.constant 0 : index
    %16 = vector.load %arg3[%c0_9, %c0_10] : memref<1152x32xf32, #tpu.memory_space<vmem>>, vector<1152x32xf32>
    %cst_11 = arith.constant dense<0.000000e+00> : vector<2x32xf32>
    %17 = tpu.matmul %15, %16, %cst_11 {dimension_numbers = #tpu.dot_dimension_numbers<[1], [0], [0], [1], [0, 0, 1, 1], [], []>} : vector<2x1152xf32>, vector<1152x32xf32>, vector<2x32xf32> -> vector<2x32xf32>
    %c0_12 = arith.constant 0 : index
    %c0_13 = arith.constant 0 : index
    %18 = vector.load %arg4[%c0_12, %c0_13] : memref<1x32xf32, #tpu.memory_space<vmem>>, vector<1x32xf32>
    %19 = vector.broadcast %18 : vector<1x32xf32> to vector<2x32xf32>
    %20 = arith.addf %17, %19 : vector<2x32xf32>
    %cst_14 = arith.constant 0.000000e+00 : f32
    %21 = vector.broadcast %cst_14 : f32 to vector<2x32xf32>
    %22 = arith.cmpf ogt, %20, %21 : vector<2x32xf32>
    %23 = math.exp %20 : vector<2x32xf32>
    %cst_15 = arith.constant 1.000000e+00 : f32
    %24 = vector.broadcast %cst_15 : f32 to vector<2x32xf32>
    %25 = arith.subf %23, %24 : vector<2x32xf32>
    %cst_16 = arith.constant 1.67326319 : f32
    %26 = vector.broadcast %cst_16 : f32 to vector<2x32xf32>
    %27 = arith.mulf %26, %25 : vector<2x32xf32>
    %28 = arith.select %22, %20, %27 : vector<2x32xi1>, vector<2x32xf32>
    %cst_17 = arith.constant 1.05070102 : f32
    %29 = vector.broadcast %cst_17 : f32 to vector<2x32xf32>
    %30 = arith.mulf %29, %28 : vector<2x32xf32>
    %c0_18 = arith.constant 0 : index
    %c0_19 = arith.constant 0 : index
    %31 = vector.load %arg5[%c0_18, %c0_19] : memref<32x32xf32, #tpu.memory_space<vmem>>, vector<32x32xf32>
    %cst_20 = arith.constant dense<0.000000e+00> : vector<2x32xf32>
    %32 = tpu.matmul %30, %31, %cst_20 {dimension_numbers = #tpu.dot_dimension_numbers<[1], [0], [0], [1], [0, 0, 1, 1], [], []>} : vector<2x32xf32>, vector<32x32xf32>, vector<2x32xf32> -> vector<2x32xf32>
    %c0_21 = arith.constant 0 : index
    %c0_22 = arith.constant 0 : index
    %33 = vector.load %arg6[%c0_21, %c0_22] : memref<1x32xf32, #tpu.memory_space<vmem>>, vector<1x32xf32>
    %34 = vector.broadcast %33 : vector<1x32xf32> to vector<2x32xf32>
    %35 = arith.addf %32, %34 : vector<2x32xf32>
    %36 = vector.extract_strided_slice %35 {offsets = [0, 0], sizes = [2, 16], strides = [1, 1]} : vector<2x32xf32> to vector<2x16xf32>
    %37 = vector.extract_strided_slice %35 {offsets = [0, 16], sizes = [2, 16], strides = [1, 1]} : vector<2x32xf32> to vector<2x16xf32>
    %cst_23 = arith.constant -1.700000e+01 : f32
    %cst_24 = arith.constant 1.000000e+01 : f32
    %38 = vector.broadcast %cst_23 : f32 to vector<2x16xf32>
    %39 = arith.maximumf %38, %37 : vector<2x16xf32>
    %40 = vector.broadcast %cst_24 : f32 to vector<2x16xf32>
    %41 = arith.minimumf %40, %39 : vector<2x16xf32>
    %cst_25 = arith.constant 5.000000e-01 : f32
    %42 = vector.broadcast %cst_25 : f32 to vector<2x16xf32>
    %43 = arith.mulf %42, %41 : vector<2x16xf32>
    %44 = math.exp %43 : vector<2x16xf32>
    %45 = arith.mulf %44, %44 : vector<2x16xf32>
    %c0_26 = arith.constant 0 : index
    %c0_27 = arith.constant 0 : index
    %46 = vector.load %arg7[%c0_26, %c0_27] : memref<2x16xf32, #tpu.memory_space<vmem>>, vector<2x16xf32>
    %47 = arith.mulf %44, %46 : vector<2x16xf32>
    %48 = arith.addf %36, %47 : vector<2x16xf32>
    %cst_28 = arith.constant 0.000000e+00 : f32
    %49 = vector.broadcast %cst_28 : f32 to vector<2x128xf32>
    %c0_29 = arith.constant 0 : index
    %c0_30 = arith.constant 0 : index
    %50 = vector.load %arg8[%c0_29, %c0_30] : memref<2x128xf32, #tpu.memory_space<vmem>>, vector<2x128xf32>
    tpu.vector_store %arg8[%c0_29, %c0_30], %49 {strides = array<i32>} : memref<2x128xf32, #tpu.memory_space<vmem>>, vector<2x128xf32>,
    %c0_31 = arith.constant 0 : index
    %c0_32 = arith.constant 0 : index
    %51 = vector.load %arg8[%c0_31, %c0_32] : memref<2x128xf32, #tpu.memory_space<vmem>>, vector<2x16xf32>
    tpu.vector_store %arg8[%c0_31, %c0_32], %36 {strides = array<i32>} : memref<2x128xf32, #tpu.memory_space<vmem>>, vector<2x16xf32>,
    %c0_33 = arith.constant 0 : index
    %c16 = arith.constant 16 : index
    %52 = vector.load %arg8[%c0_33, %c16] : memref<2x128xf32, #tpu.memory_space<vmem>>, vector<2x16xf32>
    tpu.vector_store %arg8[%c0_33, %c16], %45 {strides = array<i32>} : memref<2x128xf32, #tpu.memory_space<vmem>>, vector<2x16xf32>,
    %c0_34 = arith.constant 0 : index
    %c32 = arith.constant 32 : index
    %53 = vector.load %arg8[%c0_34, %c32] : memref<2x128xf32, #tpu.memory_space<vmem>>, vector<2x16xf32>
    tpu.vector_store %arg8[%c0_34, %c32], %48 {strides = array<i32>} : memref<2x128xf32, #tpu.memory_space<vmem>>, vector<2x16xf32>,
    return
  }
}

</mosaic_0001>

<bundles_post_ra>
// kernel: encoder_b8_forward.1
= control target key start
LH: loop header
LB: loop body
LE: loop exit
PB: predicated region body
PF: predicated region fallthrough
CT: control target
= control target key end

     0   :  { %vm101_vm0 = vcmask 1043456   ;;  %vm97_vm1 = vcmask 293888   ;;  %s829_s18 = smov 16   ;;  %vm715_vm12 = vcmask 261120   ;;  %vm757_vm13 = vcmask 123904   ;;  %s831_s22 = smov 112   ;;  %s1541_s1 = inlined_call_operand.vmem [shape: f32[36,1152], index: 1, kind: input, shape index: {}]   ;;  %s1542_s0 = inlined_call_operand.vmem [shape: f32[2,36], index: 0, kind: input, shape index: {}]   ;;  %s1543_s3 = inlined_call_operand.vmem [shape: f32[1152,32], index: 3, kind: input, shape index: {}]   ;;  %s1544_s2 = inlined_call_operand.vmem [shape: f32[1,1152], index: 2, kind: input, shape index: {}]   ;;  %s1545_s4 = inlined_call_operand.vmem [shape: f32[1,32], index: 4, kind: input, shape index: {}]   ;;  %s1546_s6 = inlined_call_operand.vmem [shape: f32[1,32], index: 6, kind: input, shape index: {}]   ;;  %s1547_s5 = inlined_call_operand.vmem [shape: f32[32,32], index: 5, kind: input, shape index: {}]   ;;  %s1548_s7 = inlined_call_operand.vmem [shape: f32[2,16], index: 7, kind: input, shape index: {}]   ;;  %s1549_s8 = inlined_call_operand.vmem [shape: f32[2,128], index: 8, kind: output, shape index: {}]  }
   0x1   :  { %v66_v0 = vld [vmem:[%s1541_s1 + $0x120] sm:$0xf]  ;;  %v67_v1 = vld [vmem:[%s1541_s1 + $0x128] sm:$0xf]  ;;  %v68_v2 = vld [vmem:[%s1541_s1 + $0x130] sm:$0xf] }
   0x2   :  { %771 = vmatpush.msk.msra.mxu0 %vm101_vm0, %v66_v0  ;;  %773 = vmatpush.msk.msra.mxu3 %vm101_vm0, %v67_v1  ;;  %v57_v3 = vld [vmem:[%s1541_s1 + $0xd8] sm:$0xff]  ;;  %v58_v4 = vld [vmem:[%s1541_s1 + $0xe0] sm:$0xff]  ;;  %v59_v5 = vld [vmem:[%s1541_s1 + $0xe8] sm:$0xff]  ;;  %vm759_vm14 = vcmask 255104   ;;  %s832_s24 = smov 32   ;;  %vm765_vm15 = vcmask 386304  }
   0x3   :  { %775 = vmatpush.msk.msra.mxu2 %vm101_vm0, %v68_v2  ;;  %v48_v6 = vld [vmem:[%s1541_s1 + $0x90] sm:$0xff]  ;;  %v49_v7 = vld [vmem:[%s1541_s1 + $0x98] sm:$0xff]  ;;  %v50_v8 = vld [vmem:[%s1541_s1 + $0xa0] sm:$0xff] }
   0x4   :  { %141 = vmatpush.msra.mxu0 %v57_v3  ;;  %161 = vmatpush.msra.mxu3 %v58_v4  ;;  %v39_v9 = vld [vmem:[%s1541_s1 + $0x48] sm:$0xff]  ;;  %v40_v10 = vld [vmem:[%s1541_s1 + $0x50] sm:$0xff]  ;;  %v41_v11 = vld [vmem:[%s1541_s1 + $0x58] sm:$0xff] }
   0x5   :  { %181 = vmatpush.msra.mxu2 %v59_v5  ;;  %v30_v12 = vld [vmem:[%s1541_s1] sm:$0xff]  ;;  %v31_v13 = vld [vmem:[%s1541_s1 + $0x8] sm:$0xff]  ;;  %v32_v14 = vld [vmem:[%s1541_s1 + $0x10] sm:$0xff] }
   0x6   :  { %142 = vmatpush.msra.mxu0 %v48_v6  ;;  %162 = vmatpush.msra.mxu3 %v49_v7  ;;  %v929_v15 = vld [vmem:[%s1542_s0] sm:$0x3]  ;;  %v69_v16 = vld [vmem:[%s1541_s1 + $0x138] sm:$0xf]  ;;  %v71_v17 = vld [vmem:[%s1541_s1 + $0x148] sm:$0xf] }
   0x7   :  { %182 = vmatpush.msra.mxu2 %v50_v8  ;;  %v70_v18 = vld [vmem:[%s1541_s1 + $0x140] sm:$0xf]  ;;  %v60_v19 = vld [vmem:[%s1541_s1 + $0xf0] sm:$0xff]  ;;  %v61_v21 = vld [vmem:[%s1541_s1 + $0xf8] sm:$0xff] }
   0x8   :  { %143 = vmatpush.msra.mxu0 %v39_v9  ;;  %163 = vmatpush.msra.mxu3 %v40_v10  ;;  %v62_v20 = vld [vmem:[%s1541_s1 + $0x100] sm:$0xff]  ;;  %v51_v22 = vld [vmem:[%s1541_s1 + $0xa8] sm:$0xff]  ;;  %v53_v23 = vld [vmem:[%s1541_s1 + $0xb8] sm:$0xff] }
   0x9   :  { %183 = vmatpush.msra.mxu2 %v41_v11  ;;  %v52_v24 = vld [vmem:[%s1541_s1 + $0xb0] sm:$0xff]  ;;  %v42_v25 = vld [vmem:[%s1541_s1 + $0x60] sm:$0xff]  ;;  %v387_v27 = vld [vmem:[%s1543_s3 + $0x78] sm:$0xff] }
   0xa   :  { %144 = vmatpush.msra.mxu0 %v30_v12  ;;  %164 = vmatpush.msra.mxu3 %v31_v13  ;;  %v44_v26 = vld [vmem:[%s1541_s1 + $0x70] sm:$0xff]  ;;  %v43_v28 = vld [vmem:[%s1541_s1 + $0x68] sm:$0xff]  ;;  %v33_v30 = vld [vmem:[%s1541_s1 + $0x18] sm:$0xff] }
   0xb   :  { %184 = vmatpush.msra.mxu2 %v32_v14  ;;  %772 = vmatmul.msk.f32.vlgmr.msra.gmra.mxu0 %vm97_vm1, %v929_v15  ;;  %v386_v29 = vld [vmem:[%s1543_s3 + $0x70] sm:$0xff]  ;;  %v35_v31 = vld [vmem:[%s1541_s1 + $0x28] sm:$0xff]  ;;  %v73_v33 = vld [vmem:[%s1541_s1 + $0x158] sm:$0xf] }
   0xc   :  { %774 = vmatmul.msk.f32.vlgmr.msra.gmra.mxu3 %vm97_vm1, %v929_v15  ;;  %776 = vmatmul.msk.f32.vlgmr.msra.gmra.mxu2 %vm97_vm1, %v929_v15  ;;  %v72_v32 = vld [vmem:[%s1541_s1 + $0x150] sm:$0xf]  ;;  %v34_v34 = vld [vmem:[%s1541_s1 + $0x20] sm:$0xff]  ;;  %v385_v35 = vld [vmem:[%s1543_s3 + $0x68] sm:$0xff] }
   0xd   :  { %777 = vmatpush.msk.msrb.mxu3 %vm101_vm0, %v69_v16  ;;  %781 = vmatpush.msk.msrb.mxu2 %vm101_vm0, %v71_v17  ;;  %v63_v36 = vld [vmem:[%s1541_s1 + $0x108] sm:$0xff]  ;;  %v64_v37 = vld [vmem:[%s1541_s1 + $0x110] sm:$0xff]  ;;  %v74_v38 = vld [vmem:[%s1541_s1 + $0x160] sm:$0xf] }
   0xe   :  { %779 = vmatpush.msk.msrb.mxu0 %vm101_vm0, %v70_v18  ;;  %520 = vmatpush.msra.mxu1 %v387_v27  ;;  %v384_v39 = vld [vmem:[%s1543_s3 + $0x60] sm:$0xff]  ;;  %v55_v41 = vld [vmem:[%s1541_s1 + $0xc8] sm:$0xff]  ;;  %v65_v42 = vld [vmem:[%s1541_s1 + $0x118] sm:$0xff] }
   0xf   :  { %201 = vmatpush.msrb.mxu3 %v60_v19  ;;  %241 = vmatpush.msrb.mxu2 %v62_v20  ;;  %v54_v40 = vld [vmem:[%s1541_s1 + $0xc0] sm:$0xff]  ;;  %v45_v43 = vld [vmem:[%s1541_s1 + $0x78] sm:$0xff]  ;;  %v56_v46 = vld [vmem:[%s1541_s1 + $0xd0] sm:$0xff] }
  0x10   :  { %221 = vmatpush.msrb.mxu0 %v61_v21  ;;  %521 = vmatpush.msra.mxu1 %v386_v29  ;;  %v383_v44 = vld [vmem:[%s1543_s3 + $0x58] sm:$0xff]  ;;  %v46_v45 = vld [vmem:[%s1541_s1 + $0x80] sm:$0xff]  ;;  %v36_v47 = vld [vmem:[%s1541_s1 + $0x30] sm:$0xff] }
  0x11   :  { %202 = vmatpush.msrb.mxu3 %v51_v22  ;;  %242 = vmatpush.msrb.mxu2 %v53_v23  ;;  %v382_v48 = vld [vmem:[%s1543_s3 + $0x50] sm:$0xff]  ;;  %v37_v49 = vld [vmem:[%s1541_s1 + $0x38] sm:$0xff]  ;;  %v47_v50 = vld [vmem:[%s1541_s1 + $0x88] sm:$0xff] }
  0x12   :  { %222 = vmatpush.msrb.mxu0 %v52_v24  ;;  %522 = vmatpush.msra.mxu1 %v385_v35  ;;  %v381_v51 = vld [vmem:[%s1543_s3 + $0x48] sm:$0xff]  ;;  %v403_v52 = vld [vmem:[%s1543_s3 + $0xf8] sm:$0xff]  ;;  %v38_v53 = vld [vmem:[%s1541_s1 + $0x40] sm:$0xff] }
  0x13   :  { %203 = vmatpush.msrb.mxu3 %v42_v25  ;;  %243 = vmatpush.msrb.mxu2 %v44_v26  ;;  %v419_v54 = vld [vmem:[%s1543_s3 + $0x178] sm:$0xff]  ;;  %v380_v55 = vld [vmem:[%s1543_s3 + $0x40] sm:$0xff]  ;;  %v402_v56 = vld [vmem:[%s1543_s3 + $0xf0] sm:$0xff] }
  0x14   :  { %223 = vmatpush.msrb.mxu0 %v43_v28  ;;  %523 = vmatpush.msra.mxu1 %v384_v39  ;;  %v435_v57 = vld [vmem:[%s1543_s3 + $0x1f8] sm:$0xff]  ;;  %v418_v59 = vld [vmem:[%s1543_s3 + $0x170] sm:$0xff]  ;;  %v401_v60 = vld [vmem:[%s1543_s3 + $0xe8] sm:$0xff] }
  0x15   :  { %204 = vmatpush.msrb.mxu3 %v33_v30  ;;  %244 = vmatpush.msrb.mxu2 %v35_v31  ;;  %v379_v58 = vld [vmem:[%s1543_s3 + $0x38] sm:$0xff]  ;;  %v434_v61 = vld [vmem:[%s1543_s3 + $0x1f0] sm:$0xff]  ;;  %v417_v63 = vld [vmem:[%s1543_s3 + $0x168] sm:$0xff] }
  0x16   :  { %778 = vmatmul.msk.f32.vlgmr.msrb.gmra.mxu3 %vm97_vm1, %v929_v15  ;;  %782 = vmatmul.msk.f32.vlgmr.msrb.gmra.mxu2 %vm97_vm1, %v929_v15  ;;  %v378_v62 = vld [vmem:[%s1543_s3 + $0x30] sm:$0xff]  ;;  %v400_v0 = vld [vmem:[%s1543_s3 + $0xe0] sm:$0xff]  ;;  %v433_v1 = vld [vmem:[%s1543_s3 + $0x1e8] sm:$0xff] }
  0x17   :  { %783 = vmatpush.msk.msra.mxu2 %vm101_vm0, %v72_v32  ;;  %785 = vmatpush.msk.msra.mxu3 %vm101_vm0, %v73_v33  ;;  %v377_v2 = vld [vmem:[%s1543_s3 + $0x28] sm:$0xff]  ;;  %v416_v3 = vld [vmem:[%s1543_s3 + $0x160] sm:$0xff]  ;;  %v399_v4 = vld [vmem:[%s1543_s3 + $0xd8] sm:$0xff] }
  0x18   :  { %224 = vmatpush.msrb.mxu0 %v34_v34  ;;  %524 = vmatpush.msra.mxu1 %v383_v44  ;;  %v432_v5 = vld [vmem:[%s1543_s3 + $0x1e0] sm:$0xff]  ;;  %v415_v7 = vld [vmem:[%s1543_s3 + $0x158] sm:$0xff]  ;;  %v398_v8 = vld [vmem:[%s1543_s3 + $0xd0] sm:$0xff] }
  0x19   :  { %261 = vmatpush.msra.mxu2 %v63_v36  ;;  %281 = vmatpush.msra.mxu3 %v64_v37  ;;  %v376_v6 = vld [vmem:[%s1543_s3 + $0x20] sm:$0xff]  ;;  %v431_v9 = vld [vmem:[%s1543_s3 + $0x1d8] sm:$0xff]  ;;  %v414_v11 = vld [vmem:[%s1543_s3 + $0x150] sm:$0xff] }
  0x1a   :  { %787 = vmatpush.msk.msra.mxu0 %vm101_vm0, %v74_v38  ;;  %525 = vmatpush.msra.mxu1 %v382_v48  ;;  %v375_v10 = vld [vmem:[%s1543_s3 + $0x18] sm:$0xff]  ;;  %v397_v12 = vld [vmem:[%s1543_s3 + $0xc8] sm:$0xff]  ;;  %v430_v13 = vld [vmem:[%s1543_s3 + $0x1d0] sm:$0xff] }
  0x1b   :  { %780 = vmatmul.msk.f32.vlgmr.msrb.gmra.mxu0 %vm97_vm1, %v929_v15  ;;  %262 = vmatpush.msra.mxu2 %v54_v40  ;;  %v374_v14 = vld [vmem:[%s1543_s3 + $0x10] sm:$0xff]  ;;  %v396_v16 = vld [vmem:[%s1543_s3 + $0xc0] sm:$0xff]  ;;  %v429_v17 = vld [vmem:[%s1543_s3 + $0x1c8] sm:$0xff] }
  0x1c   :  { %282 = vmatpush.msra.mxu3 %v55_v41  ;;  %301 = vmatpush.msra.mxu0 %v65_v42  ;;  %v373_v18 = vld [vmem:[%s1543_s3 + $0x8] sm:$0xff]  ;;  %v412_v19 = vld [vmem:[%s1543_s3 + $0x140] sm:$0xff]  ;;  %v395_v20 = vld [vmem:[%s1543_s3 + $0xb8] sm:$0xff] }
  0x1d   :  { %263 = vmatpush.msra.mxu2 %v45_v43  ;;  %526 = vmatpush.msra.mxu1 %v381_v51  ;;  %v428_v21 = vld [vmem:[%s1543_s3 + $0x1c0] sm:$0xff]  ;;  %v411_v23 = vld [vmem:[%s1543_s3 + $0x138] sm:$0xff]  ;;  %v394_v25 = vld [vmem:[%s1543_s3 + $0xb0] sm:$0xff] }
  0x1e   :  { %283 = vmatpush.msra.mxu3 %v46_v45  ;;  %302 = vmatpush.msra.mxu0 %v56_v46  ;;  %v372_v22 = vld [vmem:[%s1543_s3] sm:$0xff]  ;;  %v451_v24 = vld [vmem:[%s1543_s3 + $0x278] sm:$0xff]  ;;  %v410_v27 = vld [vmem:[%s1543_s3 + $0x130] sm:$0xff] }
  0x1f   :  { %264 = vmatpush.msra.mxu2 %v36_v47  ;;  %527 = vmatpush.msra.mxu1 %v380_v55  ;;  %v427_v26 = vld [vmem:[%s1543_s3 + $0x1b8] sm:$0xff]  ;;  %v450_v28 = vld [vmem:[%s1543_s3 + $0x270] sm:$0xff]  ;;  %v393_v29 = vld [vmem:[%s1543_s3 + $0xa8] sm:$0xff] }
  0x20   :  { %284 = vmatpush.msra.mxu3 %v37_v49  ;;  %784 = vmatmul.msk.f32.vlgmr.msra.gmra.mxu2 %vm97_vm1, %v929_v15  ;;  %v426_v30 = vld [vmem:[%s1543_s3 + $0x1b0] sm:$0xff]  ;;  %v449_v31 = vld [vmem:[%s1543_s3 + $0x268] sm:$0xff]  ;;  %v392_v32 = vld [vmem:[%s1543_s3 + $0xa0] sm:$0xff] }
  0x21   :  { %786 = vmatmul.msk.f32.vlgmr.msra.gmra.mxu3 %vm97_vm1, %v929_v15  ;;  %303 = vmatpush.msra.mxu0 %v47_v50  ;;  %v448_v33 = vld [vmem:[%s1543_s3 + $0x260] sm:$0xff]  ;;  %v391_v34 = vld [vmem:[%s1543_s3 + $0x98] sm:$0xff]  ;;  %v390_v36 = vld [vmem:[%s1543_s3 + $0x90] sm:$0xff] }
  0x22   :  { %540 = vmatpush.msrb.mxu2 %v403_v52  ;;  %560 = vmatpush.msrb.mxu3 %v419_v54  ;;  %v447_v35 = vld [vmem:[%s1543_s3 + $0x258] sm:$0xff]  ;;  %v446_v37 = vld [vmem:[%s1543_s3 + $0x250] sm:$0xff]  ;;  %v389_v38 = vld [vmem:[%s1543_s3 + $0x88] sm:$0xff] }
  0x23   :  { %304 = vmatpush.msra.mxu0 %v38_v53  ;;  %528 = vmatpush.msra.mxu1 %v379_v58  ;;  %v445_v39 = vld [vmem:[%s1543_s3 + $0x248] sm:$0xff]  ;;  %v388_v42 = vld [vmem:[%s1543_s3 + $0x80] sm:$0xff]  ;;  %v467_v46 = vld [vmem:[%s1543_s3 + $0x2f8] sm:$0xff] }
  0x24   :  { %788 = vmatmul.msk.f32.vlgmr.msra.gmra.mxu0 %vm97_vm1, %v929_v15  ;;  %541 = vmatpush.msrb.mxu2 %v402_v56  ;;  %v413_v15 = vld [vmem:[%s1543_s3 + $0x148] sm:$0xff]  ;;  %v444_v43 = vld [vmem:[%s1543_s3 + $0x240] sm:$0xff]  ;;  %v443_v47 = vld [vmem:[%s1543_s3 + $0x238] sm:$0xff] }
  0x25   :  { %580 = vmatpush.msrb.mxu0 %v435_v57  ;;  %561 = vmatpush.msrb.mxu3 %v418_v59  ;;  %v409_v40 = vld [vmem:[%s1543_s3 + $0x128] sm:$0xff]  ;;  %v408_v44 = vld [vmem:[%s1543_s3 + $0x120] sm:$0xff]  ;;  %v407_v48 = vld [vmem:[%s1543_s3 + $0x118] sm:$0xff] }
  0x26   :  { %542 = vmatpush.msrb.mxu2 %v401_v60  ;;  %529 = vmatpush.msra.mxu1 %v378_v62  ;;  %v425_v41 = vld [vmem:[%s1543_s3 + $0x1a8] sm:$0xff]  ;;  %v424_v45 = vld [vmem:[%s1543_s3 + $0x1a0] sm:$0xff]  ;;  %v423_v49 = vld [vmem:[%s1543_s3 + $0x198] sm:$0xff] }
  0x27   :  { %581 = vmatpush.msrb.mxu0 %v434_v61  ;;  %562 = vmatpush.msrb.mxu3 %v417_v63  ;;  %v466_v50 = vld [vmem:[%s1543_s3 + $0x2f0] sm:$0xff]  ;;  %v465_v54 = vld [vmem:[%s1543_s3 + $0x2e8] sm:$0xff]  ;;  %v464_v58 = vld [vmem:[%s1543_s3 + $0x2e0] sm:$0xff] }
  0x28   :  { %543 = vmatpush.msrb.mxu2 %v400_v0  ;;  %530 = vmatpush.msra.mxu1 %v377_v2  ;;  %v442_v51 = vld [vmem:[%s1543_s3 + $0x230] sm:$0xff]  ;;  %v441_v55 = vld [vmem:[%s1543_s3 + $0x228] sm:$0xff]  ;;  %v440_v59 = vld [vmem:[%s1543_s3 + $0x220] sm:$0xff] }
  0x29   :  { %582 = vmatpush.msrb.mxu0 %v433_v1  ;;  %563 = vmatpush.msrb.mxu3 %v416_v3  ;;  %v406_v52 = vld [vmem:[%s1543_s3 + $0x110] sm:$0xff]  ;;  %v405_v56 = vld [vmem:[%s1543_s3 + $0x108] sm:$0xff]  ;;  %v404_v60 = vld [vmem:[%s1543_s3 + $0x100] sm:$0xff] }
  0x2a   :  { %544 = vmatpush.msrb.mxu2 %v399_v4  ;;  %531 = vmatpush.msra.mxu1 %v376_v6  ;;  %v422_v53 = vld [vmem:[%s1543_s3 + $0x190] sm:$0xff]  ;;  %v421_v57 = vld [vmem:[%s1543_s3 + $0x188] sm:$0xff]  ;;  %v420_v61 = vld [vmem:[%s1543_s3 + $0x180] sm:$0xff] }
  0x2b   :  { %583 = vmatpush.msrb.mxu0 %v432_v5  ;;  %564 = vmatpush.msrb.mxu3 %v415_v7  ;;  %v463_v62 = vld [vmem:[%s1543_s3 + $0x2d8] sm:$0xff]  ;;  %v462_v2 = vld [vmem:[%s1543_s3 + $0x2d0] sm:$0xff]  ;;  %v461_v6 = vld [vmem:[%s1543_s3 + $0x2c8] sm:$0xff] }
  0x2c   :  { %545 = vmatpush.msrb.mxu2 %v398_v8  ;;  %532 = vmatpush.msra.mxu1 %v375_v10  ;;  %v439_v63 = vld [vmem:[%s1543_s3 + $0x218] sm:$0xff]  ;;  %v438_v3 = vld [vmem:[%s1543_s3 + $0x210] sm:$0xff]  ;;  %v437_v7 = vld [vmem:[%s1543_s3 + $0x208] sm:$0xff] }
  0x2d   :  { %584 = vmatpush.msrb.mxu0 %v431_v9  ;;  %565 = vmatpush.msrb.mxu3 %v414_v11  ;;  %v483_v0 = vld [vmem:[%s1543_s3 + $0x378] sm:$0xff]  ;;  %v482_v4 = vld [vmem:[%s1543_s3 + $0x370] sm:$0xff]  ;;  %v481_v8 = vld [vmem:[%s1543_s3 + $0x368] sm:$0xff] }
  0x2e   :  { %546 = vmatpush.msrb.mxu2 %v397_v12  ;;  %533 = vmatpush.msra.mxu1 %v374_v14  ;;  %v499_v1 = vld [vmem:[%s1543_s3 + $0x3f8] sm:$0xff]  ;;  %v498_v5 = vld [vmem:[%s1543_s3 + $0x3f0] sm:$0xff]  ;;  %v497_v9 = vld [vmem:[%s1543_s3 + $0x3e8] sm:$0xff] }
  0x2f   :  { %585 = vmatpush.msrb.mxu0 %v430_v13  ;;  %566 = vmatpush.msrb.mxu3 %v413_v15  ;;  %v460_v10 = vld [vmem:[%s1543_s3 + $0x2c0] sm:$0xff]  ;;  %v459_v14 = vld [vmem:[%s1543_s3 + $0x2b8] sm:$0xff] }
  0x30   :  { %547 = vmatpush.msrb.mxu2 %v396_v16  ;;  %534 = vmatpush.msra.mxu1 %v373_v18  ;;  %v436_v11 = vld [vmem:[%s1543_s3 + $0x200] sm:$0xff]  ;;  %v479_v15 = vld [vmem:[%s1543_s3 + $0x358] sm:$0xff]  ;;  %v478_v18 = vld [vmem:[%s1543_s3 + $0x350] sm:$0xff] }
  0x31   :  { %586 = vmatpush.msrb.mxu0 %v429_v17  ;;  %567 = vmatpush.msrb.mxu3 %v412_v19  ;;  %v480_v12 = vld [vmem:[%s1543_s3 + $0x360] sm:$0xff]  ;;  %v495_v16 = vld [vmem:[%s1543_s3 + $0x3d8] sm:$0xff]  ;;  %v458_v17 = vld [vmem:[%s1543_s3 + $0x2b0] sm:$0xff] }
  0x32   :  { %548 = vmatpush.msrb.mxu2 %v395_v20  ;;  %535 = vmatpush.msra.mxu1 %v372_v22  ;;  %v496_v13 = vld [vmem:[%s1543_s3 + $0x3e0] sm:$0xff]  ;;  %v494_v19 = vld [vmem:[%s1543_s3 + $0x3d0] sm:$0xff]  ;;  %v477_v22 = vld [vmem:[%s1543_s3 + $0x348] sm:$0xff] }
  0x33   :  { %587 = vmatpush.msrb.mxu0 %v428_v21  ;;  %568 = vmatpush.msrb.mxu3 %v411_v23  ;;  %v1354_v20 = vld [vmem:[%s1544_s2] sm:$0xff]  ;;  %v457_v21 = vld [vmem:[%s1543_s3 + $0x2a8] sm:$0xff] }
  0x34   :  { %600 = vmatpush.msrb.mxu1 %v451_v24  ;;  %549 = vmatpush.msrb.mxu2 %v394_v25  ;;  %v493_v23 = vld [vmem:[%s1543_s3 + $0x3c8] sm:$0xff]  ;;  %v79_v24 = vperm.slane %v1354_v20, 0  ;;  %v456_v25 = vld [vmem:[%s1543_s3 + $0x2a0] sm:$0xff] }
  0x35   :  { %588 = vmatpush.msrb.mxu0 %v427_v26  ;;  %569 = vmatpush.msrb.mxu3 %v410_v27  ;;  %v476_v26 = vld [vmem:[%s1543_s3 + $0x340] sm:$0xff] }
  0x36   :  { %601 = vmatpush.msrb.mxu1 %v450_v28  ;;  %550 = vmatpush.msrb.mxu2 %v393_v29  ;;  %v492_v27 = vld [vmem:[%s1543_s3 + $0x3c0] sm:$0xff]  ;;  %v455_v28 = vld [vmem:[%s1543_s3 + $0x298] sm:$0xff] }
  0x37   :  { %589 = vmatpush.msrb.mxu0 %v426_v30  ;;  %570 = vmatpush.msrb.mxu3 %v409_v40  ;;  %v475_v30 = vld [vmem:[%s1543_s3 + $0x338] sm:$0xff]  ;;  %v473_v40 = vld [vmem:[%s1543_s3 + $0x328] sm:$0xff] }
  0x38   :  { %602 = vmatpush.msrb.mxu1 %v449_v31  ;;  %551 = vmatpush.msrb.mxu2 %v392_v32  ;;  %v491_v31 = vld [vmem:[%s1543_s3 + $0x3b8] sm:$0xff] }
  0x39   :  { %590 = vmatpush.msrb.mxu0 %v425_v41  ;;  %571 = vmatpush.msrb.mxu3 %v408_v44  ;;  %v489_v41 = vld [vmem:[%s1543_s3 + $0x3a8] sm:$0xff]  ;;  %v488_v44 = vld [vmem:[%s1543_s3 + $0x3a0] sm:$0xff] }
  0x3a   :  { %603 = vmatpush.msrb.mxu1 %v448_v33  ;;  %552 = vmatpush.msrb.mxu2 %v391_v34  ;;  %v454_v33 = vld [vmem:[%s1543_s3 + $0x290] sm:$0xff] }
  0x3b   :  { %591 = vmatpush.msrb.mxu0 %v424_v45  ;;  %572 = vmatpush.msrb.mxu3 %v407_v48  ;;  %v474_v34 = vld [vmem:[%s1543_s3 + $0x330] sm:$0xff] }
  0x3c   :  { %604 = vmatpush.msrb.mxu1 %v447_v35  ;;  %553 = vmatpush.msrb.mxu2 %v390_v36  ;;  %v490_v35 = vld [vmem:[%s1543_s3 + $0x3b0] sm:$0xff] }
  0x3d   :  { %592 = vmatpush.msrb.mxu0 %v423_v49  ;;  %573 = vmatpush.msrb.mxu3 %v406_v52  ;;  %v471_v49 = vld [vmem:[%s1543_s3 + $0x318] sm:$0xff] }
  0x3e   :  { %605 = vmatpush.msrb.mxu1 %v446_v37  ;;  %554 = vmatpush.msrb.mxu2 %v389_v38  ;;  %v453_v37 = vld [vmem:[%s1543_s3 + $0x288] sm:$0xff]  ;;  %v80_v38 = vperm.slane %v1354_v20, 1 }
  0x3f   :  { %593 = vmatpush.msrb.mxu0 %v422_v53  ;;  %574 = vmatpush.msrb.mxu3 %v405_v56 }
  0x40   :  { %606 = vmatpush.msrb.mxu1 %v445_v39  ;;  %555 = vmatpush.msrb.mxu2 %v388_v42  ;;  %v81_v39 = vperm.slane %v1354_v20, 2  ;;  %v452_v42 = vld [vmem:[%s1543_s3 + $0x280] sm:$0xff] }
  0x41   :  { %594 = vmatpush.msrb.mxu0 %v421_v57  ;;  %575 = vmatpush.msrb.mxu3 %v404_v60  ;;  %v469_v57 = vld [vmem:[%s1543_s3 + $0x308] sm:$0xff]  ;;  %v82_v60 = vperm.slane %v1354_v20, 3 }
  0x42   :  { %607 = vmatpush.msrb.mxu1 %v444_v43  ;;  %620 = vmatpush.msra.mxu2 %v467_v46  ;;  %v472_v43 = vld [vmem:[%s1543_s3 + $0x320] sm:$0xff] }
  0x43   :  { %595 = vmatpush.msrb.mxu0 %v420_v61  ;;  %640 = vmatpush.msra.mxu3 %v483_v0  ;;  %v84_v61 = vperm.slane %v1354_v20, 5  ;;  %v484_v0 = vld [vmem:[%s1543_s3 + $0x380] sm:$0xff] }
  0x44   :  { %608 = vmatpush.msrb.mxu1 %v443_v47  ;;  %621 = vmatpush.msra.mxu2 %v466_v50  ;;  %v487_v50 = vld [vmem:[%s1543_s3 + $0x398] sm:$0xff] }
  0x45   :  { %660 = vmatpush.msra.mxu0 %v499_v1  ;;  %641 = vmatpush.msra.mxu3 %v482_v4 }
  0x46   :  { %609 = vmatpush.msrb.mxu1 %v442_v51  ;;  %622 = vmatpush.msra.mxu2 %v465_v54  ;;  %v470_v54 = vld [vmem:[%s1543_s3 + $0x310] sm:$0xff] }
  0x47   :  { %661 = vmatpush.msra.mxu0 %v498_v5  ;;  %642 = vmatpush.msra.mxu3 %v481_v8 }
  0x48   :  { %610 = vmatpush.msrb.mxu1 %v441_v55  ;;  %623 = vmatpush.msra.mxu2 %v464_v58  ;;  %v486_v55 = vld [vmem:[%s1543_s3 + $0x390] sm:$0xff]  ;;  %v485_v58 = vld [vmem:[%s1543_s3 + $0x388] sm:$0xff] }
  0x49   :  { %662 = vmatpush.msra.mxu0 %v497_v9  ;;  %643 = vmatpush.msra.mxu3 %v480_v12 }
  0x4a   :  { %611 = vmatpush.msrb.mxu1 %v440_v59  ;;  %624 = vmatpush.msra.mxu2 %v463_v62  ;;  %v83_v59 = vperm.slane %v1354_v20, 4 }
  0x4b   :  { %663 = vmatpush.msra.mxu0 %v496_v13  ;;  %644 = vmatpush.msra.mxu3 %v479_v15 }
  0x4c   :  { %612 = vmatpush.msrb.mxu1 %v439_v63  ;;  %625 = vmatpush.msra.mxu2 %v462_v2  ;;  %v468_v63 = vld [vmem:[%s1543_s3 + $0x300] sm:$0xff] }
  0x4d   :  { %664 = vmatpush.msra.mxu0 %v495_v16  ;;  %645 = vmatpush.msra.mxu3 %v478_v18 }
  0x4e   :  { %613 = vmatpush.msrb.mxu1 %v438_v3  ;;  %626 = vmatpush.msra.mxu2 %v461_v6 }
  0x4f   :  { %665 = vmatpush.msra.mxu0 %v494_v19  ;;  %646 = vmatpush.msra.mxu3 %v477_v22  ;;  %v513_v19 = vld [vmem:[%s1543_s3 + $0x468] sm:$0xff] }
  0x50   :  { %614 = vmatpush.msrb.mxu1 %v437_v7  ;;  %627 = vmatpush.msra.mxu2 %v460_v10  ;;  %v515_v7 = vld [vmem:[%s1543_s3 + $0x478] sm:$0xff]  ;;  %v804_v22 = vld [vmem:[%s1544_s2 + $0x8] ss:$0 sm:$0xff] }
  0x51   :  { %666 = vmatpush.msra.mxu0 %v493_v23  ;;  %647 = vmatpush.msra.mxu3 %v476_v26 }
  0x52   :  { %615 = vmatpush.msrb.mxu1 %v436_v11  ;;  %628 = vmatpush.msra.mxu2 %v459_v14  ;;  %v514_v14 = vld [vmem:[%s1543_s3 + $0x470] sm:$0xff] }
  0x53   :  { %667 = vmatpush.msra.mxu0 %v492_v27  ;;  %648 = vmatpush.msra.mxu3 %v475_v30  ;;  %v85_v27 = vperm.slane %v1354_v20, 6  ;;  %v86_v30 = vperm.slane %v1354_v20, 7 }
  0x54   :  { %629 = vmatpush.msra.mxu2 %v458_v17 }
  0x55   :  { %668 = vmatpush.msra.mxu0 %v491_v31  ;;  %649 = vmatpush.msra.mxu3 %v474_v34  ;;  %v511_v31 = vld [vmem:[%s1543_s3 + $0x458] sm:$0xff] }
  0x56   :  { %630 = vmatpush.msra.mxu2 %v457_v21 }
  0x57   :  { %669 = vmatpush.msra.mxu0 %v490_v35  ;;  %650 = vmatpush.msra.mxu3 %v473_v40  ;;  %v510_v35 = vld [vmem:[%s1543_s3 + $0x450] sm:$0xff] }
  0x58   :  { %631 = vmatpush.msra.mxu2 %v456_v25 }
  0x59   :  { %670 = vmatpush.msra.mxu0 %v489_v41  ;;  %651 = vmatpush.msra.mxu3 %v472_v43  ;;  %v509_v43 = vld [vmem:[%s1543_s3 + $0x448] sm:$0xff] }
  0x5a   :  { %632 = vmatpush.msra.mxu2 %v455_v28 }
  0x5b   :  { %671 = vmatpush.msra.mxu0 %v488_v44  ;;  %652 = vmatpush.msra.mxu3 %v471_v49 }
  0x5c   :  { %633 = vmatpush.msra.mxu2 %v454_v33 }
  0x5d   :  { %672 = vmatpush.msra.mxu0 %v487_v50  ;;  %653 = vmatpush.msra.mxu3 %v470_v54  ;;  %v507_v54 = vld [vmem:[%s1543_s3 + $0x438] sm:$0xff] }
  0x5e   :  { %634 = vmatpush.msra.mxu2 %v453_v37 }
  0x5f   :  { %673 = vmatpush.msra.mxu0 %v486_v55  ;;  %654 = vmatpush.msra.mxu3 %v469_v57 }
  0x60   :  { %635 = vmatpush.msra.mxu2 %v452_v42 }
  0x61   :  { %674 = vmatpush.msra.mxu0 %v485_v58  ;;  %655 = vmatpush.msra.mxu3 %v468_v63  ;;  %v506_v58 = vld [vmem:[%s1543_s3 + $0x430] sm:$0xff]  ;;  %v504_v63 = vld [vmem:[%s1543_s3 + $0x420] sm:$0xff] }
  0x63   :  { %675 = vmatpush.msra.mxu0 %v484_v0 }
  0x88   :  { %v146_v29 = vpop.f32.mrf.mxu0 }
  0x89   :  { %v147_v32 = vadd.f32 %v146_v29, %v79_v24  ;;  %v512_v24 = vld [vmem:[%s1543_s3 + $0x460] sm:$0xff] }
  0x8b   :  { %v318_v36 = vmul.f32 1.442695, %v147_v32  ;;  %vm309_vm2 = vcmp.gt.f32.partialorder %v147_v32, 0.0 }
  0x8d   :  { %807 = vpow2.f32 %v318_v36 }
  0x8f   :  { %v166_v45 = vpop.f32.mrf.mxu3  ;;  %v186_v46 = vpop.f32.mrf.mxu2 }
  0x90   :  { %v167_v47 = vadd.f32 %v166_v45, %v80_v38  ;;  %v187_v48 = vadd.f32 %v186_v46, %v81_v39 }
  0x92   :  { %v320_v51 = vmul.f32 1.442695, %v167_v47  ;;  %v322_v52 = vmul.f32 1.442695, %v187_v48  ;;  %vm310_vm3 = vcmp.gt.f32.partialorder %v167_v47, 0.0  ;;  %vm311_vm4 = vcmp.gt.f32.partialorder %v187_v48, 0.0 }
  0x93   :  { %v808_v53 = vpop.eup %807 }
  0x94   :  { %809 = vpow2.f32 %v320_v51  ;;  %v789_v56 = vadd.f32 -1.0, %v808_v53 }
  0x95   :  { %811 = vpow2.f32 %v322_v52 }
  0x96   :  { %v345_v62 = vmul.f32 1.6732632, %v789_v56 }
  0x98   :  { %v226_v1 = vpop.f32.mrf.mxu0  ;;  %v354_v2 = vsel %vm309_vm2, %v147_v32, %v345_v62 }
  0x99   :  { %v1440_v3 = vadd.f32 %v226_v1, %v83_v59  ;;  %v206_v4 = vpop.f32.mrf.mxu3  ;;  %v246_v5 = vpop.f32.mrf.mxu2  ;;  %v363_v6 = vmul.f32 1.050701, %v354_v2 }
  0x9a   :  { %v810_v8 = vpop.eup %809  ;;  %v207_v9 = vadd.f32 %v206_v4, %v82_v60  ;;  %v1445_v10 = vadd.f32 %v246_v5, %v84_v61  ;;  %v505_v60 = vld [vmem:[%s1543_s3 + $0x428] sm:$0xff] }
  0x9b   :  { %v812_v11 = vpop.eup %811  ;;  %v790_v12 = vadd.f32 -1.0, %v810_v8  ;;  %v326_v13 = vmul.f32 1.442695, %v1440_v3  ;;  %536 = vmatmul.f32.vlgmr.msra.gmra.mxu1 %v363_v6  ;;  %vm313_vm5 = vcmp.gt.f32.partialorder %v1440_v3, 0.0 }
  0x9c   :  { %v791_v15 = vadd.f32 -1.0, %v812_v11  ;;  %v324_v16 = vmul.f32 1.442695, %v207_v9  ;;  %680 = vmatpush.msra.mxu1 %v515_v7  ;;  %v328_v18 = vmul.f32 1.442695, %v1445_v10  ;;  %vm312_vm6 = vcmp.gt.f32.partialorder %v207_v9, 0.0 }
  0x9d   :  { %v346_v17 = vmul.f32 1.6732632, %v790_v12  ;;  %813 = vpow2.f32 %v326_v13  ;;  %vm314_vm7 = vcmp.gt.f32.partialorder %v1445_v10, 0.0  ;;  %v502_v7 = vld [vmem:[%s1543_s3 + $0x410] sm:$0xff]  ;;  %v501_v11 = vld [vmem:[%s1543_s3 + $0x408] sm:$0xff] }
  0x9e   :  { %v347_v21 = vmul.f32 1.6732632, %v791_v15  ;;  %815 = vpow2.f32 %v324_v16  ;;  %681 = vmatpush.msra.mxu1 %v514_v14  ;;  %v500_v14 = vld [vmem:[%s1543_s3 + $0x400] sm:$0xff] }
  0x9f   :  { %v355_v23 = vsel %vm310_vm3, %v167_v47, %v346_v17  ;;  %817 = vpow2.f32 %v328_v18  ;;  %v805_v16 = vld [vmem:[%s1545_s4] ss:$0 sm:$0xff] }
  0xa0   :  { %v364_v25 = vmul.f32 1.050701, %v355_v23  ;;  %v356_v26 = vsel %vm311_vm4, %v187_v48, %v347_v21  ;;  %682 = vmatpush.msra.mxu1 %v513_v19  ;;  %v508_v48 = vld [vmem:[%s1543_s3 + $0x440] sm:$0xff] }
  0xa1   :  { %v365_v28 = vmul.f32 1.050701, %v356_v26  ;;  %v306_v29 = vpop.f32.mrf.mxu0 }
  0xa2   :  { %v1466_v32 = vadd.f32 %v804_v22, %v306_v29  ;;  %556 = vmatmul.f32.vlgmr.msrb.gmra.mxu2 %v364_v25  ;;  %683 = vmatpush.msra.mxu1 %v512_v24  ;;  %v710_v22 = vld [vmem:[%s1547_s5 + $0x18] sm:$0xff]  ;;  %v709_v24 = vld [vmem:[%s1547_s5 + $0x10] sm:$0xff] }
  0xa3   :  { %v814_v33 = vpop.eup %813  ;;  %v266_v34 = vpop.f32.mrf.mxu2  ;;  %576 = vmatmul.f32.vlgmr.msrb.gmra.mxu3 %v365_v28  ;;  %731 = vmatpush.msrb.mxu2 %v710_v22  ;;  %v707_v28 = vld [vmem:[%s1547_s5] sm:$0xff] }
  0xa4   :  { %v816_v36 = vpop.eup %815  ;;  %v793_v37 = vadd.f32 -1.0, %v814_v33  ;;  %v334_v38 = vmul.f32 1.442695, %v1466_v32  ;;  %v267_v20 = vadd.f32 %v266_v34, %v85_v27  ;;  %v286_v39 = vpop.f32.mrf.mxu3  ;;  %684 = vmatpush.msra.mxu1 %v511_v31  ;;  %vm317_vm8 = vcmp.gt.f32.partialorder %v1466_v32, 0.0  ;;  %v708_v27 = vld [vmem:[%s1547_s5 + $0x8] sm:$0xff] }
  0xa5   :  { %v818_v40 = vpop.eup %817  ;;  %v792_v41 = vadd.f32 -1.0, %v816_v36  ;;  %v287_v42 = vadd.f32 %v286_v39, %v86_v30  ;;  %732 = vmatpush.msrb.mxu2 %v709_v24  ;;  %v745_v30 = vld [vmem:[%s1548_s7] sm:$0x3] }
  0xa6   :  { %v349_v44 = vmul.f32 1.6732632, %v793_v37  ;;  %v794_v45 = vadd.f32 -1.0, %v818_v40  ;;  %819 = vpow2.f32 %v334_v38  ;;  %685 = vmatpush.msra.mxu1 %v510_v35  ;;  %v330_v47 = vmul.f32 1.442695, %v267_v20  ;;  %747 = vrot.lane.b32.xlu0 %v745_v30, %s829_s18 }
  0xa7   :  { %v348_v46 = vmul.f32 1.6732632, %v792_v41  ;;  %v332_v50 = vmul.f32 1.442695, %v287_v42  ;;  %vm315_vm9 = vcmp.gt.f32.partialorder %v267_v20, 0.0  ;;  %vm316_vm10 = vcmp.gt.f32.partialorder %v287_v42, 0.0  ;;  %733 = vmatpush.msrb.mxu2 %v708_v27 }
  0xa8   :  { %v350_v49 = vmul.f32 1.6732632, %v794_v45  ;;  %686 = vmatpush.msra.mxu1 %v509_v43  ;;  %v358_v51 = vsel %vm313_vm5, %v1440_v3, %v349_v44  ;;  %821 = vpow2.f32 %v330_v47  ;;  %v503_v3 = vld [vmem:[%s1543_s3 + $0x418] sm:$0xff]  ;;  %v806_v47 = vld [vmem:[%s1546_s6] ss:$0 sm:$0xff] }
  0xa9   :  { %v357_v52 = vsel %vm312_vm6, %v207_v9, %v348_v46  ;;  %v367_v53 = vmul.f32 1.050701, %v358_v51  ;;  %823 = vpow2.f32 %v332_v50  ;;  %734 = vmatpush.msrb.mxu2 %v707_v28  ;;  %v830_v46 = vmov 0.0  }
  0xaa   :  { %v366_v55 = vmul.f32 1.050701, %v357_v52  ;;  %v359_v56 = vsel %vm314_vm7, %v1445_v10, %v350_v49  ;;  %687 = vmatpush.msra.mxu1 %v508_v48  ;;  %756 = vst [vmem:[%s1549_s8] sm:$0x3] %v830_v46 }
  0xab   :  { %v368_v57 = vmul.f32 1.050701, %v359_v56  ;;  %616 = vmatmul.f32.vlgmr.msrb.gmra.mxu1 %v367_v53 }
  0xac   :  { %v820_v59 = vpop.eup %819  ;;  %596 = vmatmul.f32.vlgmr.msrb.gmra.mxu0 %v366_v55  ;;  %688 = vmatpush.msra.mxu1 %v507_v54 }
  0xad   :  { %636 = vmatmul.f32.vlgmr.msra.gmra.mxu2 %v368_v57  ;;  %v797_v61 = vadd.f32 -1.0, %v820_v59 }
  0xae   :  { %689 = vmatpush.msra.mxu1 %v506_v58  ;;  %v822_v62 = vpop.eup %821 }
  0xaf   :  { %v824_v0 = vpop.eup %823  ;;  %v795_v1 = vadd.f32 -1.0, %v822_v62  ;;  %v353_v4 = vmul.f32 1.6732632, %v797_v61 }
  0xb0   :  { %690 = vmatpush.msra.mxu1 %v505_v60  ;;  %v796_v2 = vadd.f32 -1.0, %v824_v0 }
  0xb1   :  { %v351_v5 = vmul.f32 1.6732632, %v795_v1  ;;  %v362_v12 = vsel %vm317_vm8, %v1466_v32, %v353_v4 }
  0xb2   :  { %691 = vmatpush.msra.mxu1 %v504_v63  ;;  %v352_v6 = vmul.f32 1.6732632, %v796_v2  ;;  %v371_v15 = vmul.f32 1.050701, %v362_v12 }
  0xb3   :  { %v360_v8 = vsel %vm315_vm9, %v267_v20, %v351_v5 }
  0xb4   :  { %692 = vmatpush.msra.mxu1 %v503_v3  ;;  %v369_v9 = vmul.f32 1.050701, %v360_v8  ;;  %v361_v10 = vsel %vm316_vm10, %v287_v42, %v352_v6 }
  0xb5   :  { %v370_v13 = vmul.f32 1.050701, %v361_v10 }
  0xb6   :  { %693 = vmatpush.msra.mxu1 %v502_v7  ;;  %656 = vmatmul.f32.vlgmr.msra.gmra.mxu3 %v369_v9 }
  0xb7   :  { %676 = vmatmul.f32.vlgmr.msra.gmra.mxu0 %v370_v13 }
  0xb8   :  { %694 = vmatpush.msra.mxu1 %v501_v11 }
  0xba   :  { %695 = vmatpush.msra.mxu1 %v500_v14 }
  0xbb   :  { %696 = vmatmul.f32.vlgmr.msra.gmra.mxu1 %v371_v15 }
 0x118   :  { %v537_v17 = vpop.f32.mrf.mxu1  ;;  %v748_v54 = vpop.permute.xlu0 %747 }
 0x119   :  { %v538_v19 = vadd.f32 %v805_v16, %v537_v17 }
 0x125   :  { %v557_v18 = vpop.f32.mrf.mxu2 }
 0x126   :  { %v558_v21 = vadd.f32 %v557_v18, %v538_v19  ;;  %v577_v23 = vpop.f32.mrf.mxu3 }
 0x128   :  { %v578_v25 = vadd.f32 %v577_v23, %v558_v21  ;;  %v617_v31 = vpop.f32.mrf.mxu1 }
 0x129   :  { %v597_v26 = vpop.f32.mrf.mxu0 }
 0x12a   :  { %v598_v29 = vadd.f32 %v597_v26, %v578_v25 }
 0x12c   :  { %v618_v32 = vadd.f32 %v617_v31, %v598_v29 }
 0x130   :  { %v637_v33 = vpop.f32.mrf.mxu2 }
 0x131   :  { %v638_v34 = vadd.f32 %v637_v33, %v618_v32 }
 0x134   :  { %v677_v37 = vpop.f32.mrf.mxu0 }
 0x138   :  { %v697_v20 = vpop.f32.mrf.mxu1 }
 0x139   :  { %v657_v35 = vpop.f32.mrf.mxu3 }
 0x13a   :  { %v658_v36 = vadd.f32 %v657_v35, %v638_v34 }
 0x13c   :  { %v678_v38 = vadd.f32 %v677_v37, %v658_v36 }
 0x13e   :  { %v698_v39 = vadd.f32 %v697_v20, %v678_v38 }
 0x140   :  { %v701_v40 = vmul.f32 1.442695, %v698_v39  ;;  %vm700_vm11 = vcmp.gt.f32.partialorder %v698_v39, 0.0 }
 0x142   :  { %825 = vpow2.f32 %v701_v40 }
 0x148   :  { %v826_v41 = vpop.eup %825 }
 0x149   :  { %v798_v42 = vadd.f32 -1.0, %v826_v41 }
 0x14b   :  { %v704_v43 = vmul.f32 1.6732632, %v798_v42 }
 0x14d   :  { %v705_v44 = vsel %vm700_vm11, %v698_v39, %v704_v43 }
 0x14e   :  { %v706_v45 = vmul.f32 1.050701, %v705_v44 }
 0x150   :  { %799 = vmatmul.msk.f32.vlgmr.msrb.gmra.mxu2 %vm715_vm12, %v706_v45 }
 0x1d3   :  { %v736_v48 = vpop.f32.mrf.mxu2 }
 0x1d4   :  { %v737_v49 = vadd.f32 %v806_v47, %v736_v48 }
 0x1d6   :  { %v739_v50 = vmax.f32 %v737_v49, -17.0  ;;  %758 = vst.msk [vmem:[%s1549_s8] sm:$0x3] %vm757_vm13, %v737_v49 }
 0x1d8   :  { %v740_v51 = vmin.f32 %v739_v50, 10.0 }
 0x1da   :  { %v741_v52 = vmul.f32 0.5, %v740_v51 }
 0x1dc   :  { %v742_v53 = vmul.f32 1.442695, %v741_v52 }
 0x1de   :  { %827 = vpow2.f32 %v742_v53 }
 0x1e4   :  { %v828_v55 = vpop.eup %827 }
 0x1e5   :  { %v744_v56 = vmul.f32 %v828_v55, %v828_v55  ;;  %v750_v57 = vmul.f32 %v828_v55, %v748_v54 }
 0x1e7   :  { %752 = vrot.lane.b32.xlu0 %v750_v57, %s831_s22  ;;  %760 = vst.msk [vmem:[%s1549_s8] sm:$0x3] %vm759_vm14, %v744_v56 }
 0x259   :  { %v753_v58 = vpop.permute.xlu0 %752 }
 0x25a   :  { %v755_v59 = vadd.f32 %v753_v58, %v737_v49 }
 0x25c   :  { %762 = vrot.lane.b32.xlu1 %v755_v59, %s832_s24 }
 0x2ce   :  { %v763_v60 = vpop.permute.xlu1 %762 }
 0x2cf   :  { %766 = vst.msk [vmem:[%s1549_s8] sm:$0x3] %vm765_vm15, %v763_v60 }

</bundles_post_ra>
